<compile_context>
chip_gen: v5e
topology: v5e:2x2
jax: 0.10.0
libtpu: 0.0.40
codegen_flags: <defaults>
</compile_context>

<pallas_src>
import functools

import jax
import jax.numpy as jnp
import numpy as np
from jax.experimental import pallas as pl
from jax.experimental.pallas import tpu as pltpu


def _cdiv(a, b):
    return (a + b - 1) // b


def _round_up(x, m):
    return _cdiv(x, m) * m


def _sploss_reduce_kernel(d2_ref, sum_out_ref, cnt_out_ref, sum_acc, cnt_acc,
                          *, kernel, delta, eps):
    """Streams (block_rows, lanes) tiles of squared distances, folds each tile
    into small (8, lanes) VMEM accumulators, reduces once at the end."""
    i = pl.program_id(1)

    @pl.when(i == 0)
    def _():
        sum_acc[...] = jnp.zeros_like(sum_acc)
        if kernel == 'MacDonald':
            cnt_acc[...] = jnp.zeros_like(cnt_acc)

    d2 = d2_ref[...]                                   # (br, lanes)
    br, lanes = d2.shape
    if kernel == 'MacDonald':
        # Padded elements are +inf -> hit == False, p == 0, never counted.
        hit = d2 < (delta * delta)
        d = jnp.sqrt(d2)                               # EUP; only for value
        val = delta - d
        p = jnp.where(hit, val * val, 0.0)
        cnt = (p > 0.0).astype(jnp.float32)
        # Fold sublane-groups: pure vreg adds (no XLU), tiny accumulators.
        cnt_acc[...] += jnp.sum(cnt.reshape(br // 8, 8, lanes), axis=0)
    else:  # 'repulsion'; padded elements: 1/(inf + eps) == 0 exactly.
        p = 1.0 / (d2 + eps)
    sum_acc[...] += jnp.sum(p.reshape(br // 8, 8, lanes), axis=0)

    @pl.when(i == pl.num_programs(1) - 1)
    def _():
        sum_out_ref[...] = jnp.sum(sum_acc[...], keepdims=True).reshape(1, 1, 1)
        if kernel == 'MacDonald':
            cnt_out_ref[...] = jnp.sum(cnt_acc[...],
                                       keepdims=True).reshape(1, 1, 1)
        else:
            cnt_out_ref[...] = jnp.zeros_like(cnt_out_ref)


def _sploss_elem_kernel(d2_ref, p_ref, *, kernel, delta, eps):
    """reduction='none': per-pair kernel value, (B, block_p) tiles."""
    d2 = d2_ref[...]
    if kernel == 'MacDonald':
        d = jnp.sqrt(d2)
        val = delta - d
        p_ref[...] = jnp.where(d2 < (delta * delta), val * val, 0.0)
    else:
        p_ref[...] = 1.0 / (d2 + eps)


def self_proximity_loss(vertices, pairs, *, reduction='mean',
                        kernel='MacDonald', delta=None, eps=1e-6,
                        block_rows=256, lanes=1024, num_cores=2):
    """JAX/Pallas equivalent of SelfProximityLoss.forward.

    vertices: (B, N, C) float32
    pairs:    (P, 2)    int32
    """
    if reduction not in ['none', 'sum', 'mean']:
        raise ValueError(f"Invalid reduction mode: {reduction}.")
    if kernel not in ['MacDonald', 'repulsion']:
        raise ValueError(f"Invalid kernel: {kernel}.")
    if kernel == 'MacDonald' and delta is None:
        raise ValueError('delta must be specified when using MacDonald kernel.')

    vertices = jnp.asarray(vertices, jnp.float32)
    pairs = jnp.asarray(pairs, jnp.int32)
    B, N, C = vertices.shape
    P = pairs.shape[0]
    delta_f = 0.0 if delta is None else float(delta)
    eps_f = float(eps)

    if P == 0:  # empty pair list: mirror torch semantics without launching.
        if reduction == 'none':
            return jnp.zeros((B, 0), jnp.float32)
        if reduction == 'sum':
            return jnp.float32(0.0)
        if kernel == 'MacDonald':
            return jnp.float32(0.0) / jnp.float32(eps_f)
        return jnp.array(jnp.nan, jnp.float32)   # mean of empty tensor

    # Glue (fused by XLA into the gather): squared pair distances, (B, P) f32.
    v0 = vertices[:, pairs[:, 0], :]
    v1 = vertices[:, pairs[:, 1], :]
    diff = v0 - v1
    d2 = jnp.sum(diff * diff, axis=-1)            # (B, P) float32

    if reduction == 'none':
        block_p = min(2048, _round_up(P, 128))
        p_pad = _round_up(P, block_p)
        d2p = jnp.pad(d2, ((0, 0), (0, p_pad - P)), constant_values=np.inf)
        kfn = functools.partial(_sploss_elem_kernel, kernel=kernel,
                                delta=delta_f, eps=eps_f)
        p = pl.pallas_call(
            kfn,
            out_shape=jax.ShapeDtypeStruct((B, p_pad), jnp.float32),
            grid_spec=pltpu.PrefetchScalarGridSpec(
                num_scalar_prefetch=0,
                grid=(p_pad // block_p,),
                in_specs=[pl.BlockSpec((B, block_p), lambda i: (0, i))],
                out_specs=pl.BlockSpec((B, block_p), lambda i: (0, i))),
            compiler_params=pltpu.CompilerParams(
                dimension_semantics=("parallel",)),
        )(d2p)
        return p[:, :P]

    # 'sum' / 'mean': flatten to a lane-dense slab, pad with +inf.
    lanes = _round_up(max(lanes, 128), 128)
    n = B * P
    rows = _cdiv(n, lanes)
    br = _round_up(min(max(block_rows, 8), max(8, _round_up(rows, 8))), 8)
    total_blocks = _cdiv(rows, br)
    nc = num_cores if total_blocks >= num_cores else 1
    blocks_per_core = _cdiv(total_blocks, nc)
    rows_pad = nc * blocks_per_core * br
    n_pad = rows_pad * lanes

    d2_flat = jnp.pad(d2.reshape(-1), (0, n_pad - n), constant_values=np.inf)
    d2_2d = d2_flat.reshape(rows_pad, lanes)

    kfn = functools.partial(_sploss_reduce_kernel, kernel=kernel,
                            delta=delta_f, eps=eps_f)
    sum_part, cnt_part = pl.pallas_call(
        kfn,
        out_shape=(jax.ShapeDtypeStruct((nc, 1, 1), jnp.float32),
                   jax.ShapeDtypeStruct((nc, 1, 1), jnp.float32)),
        grid_spec=pltpu.PrefetchScalarGridSpec(
            num_scalar_prefetch=0,
            grid=(nc, blocks_per_core),
            in_specs=[pl.BlockSpec(
                (br, lanes),
                lambda c, i: (c * blocks_per_core + i, 0))],
            out_specs=[pl.BlockSpec((1, 1, 1), lambda c, i: (c, 0, 0)),
                       pl.BlockSpec((1, 1, 1), lambda c, i: (c, 0, 0))],
            scratch_shapes=[pltpu.VMEM((8, lanes), jnp.float32),
                            pltpu.VMEM((8, lanes), jnp.float32)]),
        compiler_params=pltpu.CompilerParams(
            dimension_semantics=("parallel", "arbitrary")),
    )(d2_2d)

    sum_p = jnp.sum(sum_part)
    if reduction == 'sum':
        return sum_p
    if kernel == 'MacDonald':
        return sum_p / (jnp.sum(cnt_part) + eps_f)
    return sum_p / n   # plain mean for repulsion kernel


def _ref_loss(vertices, pairs, *, reduction, kernel, delta, eps):
    """Pure-JAX mirror of the PyTorch forward (for validation)."""
    v0 = vertices[:, pairs[:, 0], :]
    v1 = vertices[:, pairs[:, 1], :]
    d = jnp.linalg.norm(v0 - v1, axis=-1)
    if kernel == 'MacDonald':
        p = jnp.where(d < delta, (delta - d) ** 2, 0.0)
    else:
        p = 1.0 / (d ** 2 + eps)
    if reduction == 'none':
        return p
    if reduction == 'sum':
        return p.sum()
    if kernel == 'MacDonald':
        return p.sum() / (jnp.sum(p > 0) + eps)
    return p.mean()


if __name__ == "__main__":
    key = jax.random.PRNGKey(0)
    k_v, k_p, k_v2, k_p2 = jax.random.split(key, 4)

    B, N, C = 2, 16, 3
    P = 200          # not a multiple of 128 -> exercises +inf padding
    delta = 1.5
    eps = 1e-6

    vertices = jax.random.normal(k_v, (B, N, C), dtype=jnp.float32)
    pairs = jax.random.randint(k_p, (P, 2), 0, N, dtype=jnp.int32)

    # MacDonald / mean (default config)
    out = jax.block_until_ready(
        self_proximity_loss(vertices, pairs, reduction='mean',
                            kernel='MacDonald', delta=delta, eps=eps))
    ref = _ref_loss(vertices, pairs, reduction='mean',
                    kernel='MacDonald', delta=delta, eps=eps)
    assert np.allclose(np.asarray(out), np.asarray(ref),
                       rtol=1e-4, atol=1e-5), (float(out), float(ref))

    # MacDonald / sum
    out_sum = jax.block_until_ready(
        self_proximity_loss(vertices, pairs, reduction='sum',
                            kernel='MacDonald', delta=delta, eps=eps))
    ref_sum = _ref_loss(vertices, pairs, reduction='sum',
                        kernel='MacDonald', delta=delta, eps=eps)
    assert np.allclose(np.asarray(out_sum), np.asarray(ref_sum),
                       rtol=1e-4, atol=1e-5)

    # repulsion / mean
    out_rep = jax.block_until_ready(
        self_proximity_loss(vertices, pairs, reduction='mean',
                            kernel='repulsion', eps=eps))
    ref_rep = _ref_loss(vertices, pairs, reduction='mean',
                        kernel='repulsion', delta=None, eps=eps)
    assert np.allclose(np.asarray(out_rep), np.asarray(ref_rep),
                       rtol=1e-4, atol=1e-5)

    # MacDonald / none (per-pair output)
    out_none = jax.block_until_ready(
        self_proximity_loss(vertices, pairs, reduction='none',
                            kernel='MacDonald', delta=delta, eps=eps))
    ref_none = _ref_loss(vertices, pairs, reduction='none',
                         kernel='MacDonald', delta=delta, eps=eps)
    assert out_none.shape == (B, P)
    assert np.allclose(np.asarray(out_none), np.asarray(ref_none),
                       rtol=1e-4, atol=1e-5)

    # Larger P with deliberately small tiles to exercise the multi-block
    # accumulation and the 2-way (megacore-style) partial-sum split.
    P2, N2 = 2000, 64
    vertices2 = jax.random.normal(k_v2, (B, N2, C), dtype=jnp.float32)
    pairs2 = jax.random.randint(k_p2, (P2, 2), 0, N2, dtype=jnp.int32)
    out2 = jax.block_until_ready(
        self_proximity_loss(vertices2, pairs2, reduction='mean',
                            kernel='MacDonald', delta=delta, eps=eps,
                            block_rows=8, lanes=128))
    ref2 = _ref_loss(vertices2, pairs2, reduction='mean',
                     kernel='MacDonald', delta=delta, eps=eps)
    assert np.allclose(np.asarray(out2), np.asarray(ref2),
                       rtol=1e-4, atol=1e-5), (float(out2), float(ref2))

    # repulsion / sum on the larger problem (multi-block, no count path)
    out2_rep = jax.block_until_ready(
        self_proximity_loss(vertices2, pairs2, reduction='sum',
                            kernel='repulsion', eps=eps,
                            block_rows=8, lanes=128))
    ref2_rep = _ref_loss(vertices2, pairs2, reduction='sum',
                         kernel='repulsion', delta=None, eps=eps)
    assert np.allclose(np.asarray(out2_rep), np.asarray(ref2_rep),
                       rtol=1e-4, atol=1e-5)

    print("KERNEL_OK")
</pallas_src>

<mosaic_0001>
module attributes {stable_mosaic.version = 11 : i64} {
  func.func @_sploss_reduce_kernel(%arg0: i32, %arg1: i32, %arg2: memref<8x1024xf32, #tpu.memory_space<vmem>>, %arg3: memref<1x1x1xf32, #tpu.memory_space<vmem>>, %arg4: memref<1x1x1xf32, #tpu.memory_space<vmem>>, %arg5: memref<8x1024xf32, #tpu.memory_space<vmem>>, %arg6: memref<8x1024xf32, #tpu.memory_space<vmem>>) attributes {dimension_semantics = [#tpu.dimension_semantics<parallel>, #tpu.dimension_semantics<arbitrary>], iteration_bounds = array<i64: 1, 1>, scalar_prefetch = 0 : i64, scratch_operands = 2 : i64, tpu.core_type = #tpu.core_type<tc>, window_params = [{transform_indices = @transform_0, window_bounds = array<i64: 8, 1024>}, {transform_indices = @transform_1, window_bounds = array<i64: 1, 1, 1>}, {transform_indices = @transform_2, window_bounds = array<i64: 1, 1, 1>}]} {
    %c0_i32 = arith.constant 0 : i32
    %0 = arith.cmpi eq, %arg1, %c0_i32 : i32
    %1 = arith.extui %0 : i1 to i32
    %c0_i32_0 = arith.constant 0 : i32
    %2 = arith.cmpi ne, %1, %c0_i32_0 : i32
    scf.if %2 {
      %cst_17 = arith.constant 0.000000e+00 : f32
      %29 = vector.broadcast %cst_17 : f32 to vector<8x1024xf32>
      %c0_18 = arith.constant 0 : index
      %c0_19 = arith.constant 0 : index
      %30 = vector.load %arg5[%c0_18, %c0_19] : memref<8x1024xf32, #tpu.memory_space<vmem>>, vector<8x1024xf32>
      tpu.vector_store %arg5[%c0_18, %c0_19], %29 {strides = array<i32>} : memref<8x1024xf32, #tpu.memory_space<vmem>>, vector<8x1024xf32>,
      %cst_20 = arith.constant 0.000000e+00 : f32
      %31 = vector.broadcast %cst_20 : f32 to vector<8x1024xf32>
      %c0_21 = arith.constant 0 : index
      %c0_22 = arith.constant 0 : index
      %32 = vector.load %arg6[%c0_21, %c0_22] : memref<8x1024xf32, #tpu.memory_space<vmem>>, vector<8x1024xf32>
      tpu.vector_store %arg6[%c0_21, %c0_22], %31 {strides = array<i32>} : memref<8x1024xf32, #tpu.memory_space<vmem>>, vector<8x1024xf32>,
    } else {
    }
    %c0 = arith.constant 0 : index
    %c0_1 = arith.constant 0 : index
    %3 = vector.load %arg2[%c0, %c0_1] : memref<8x1024xf32, #tpu.memory_space<vmem>>, vector<8x1024xf32>
    %cst = arith.constant 2.250000e+00 : f32
    %4 = vector.broadcast %cst : f32 to vector<8x1024xf32>
    %5 = arith.cmpf olt, %3, %4 : vector<8x1024xf32>
    %6 = math.sqrt %3 : vector<8x1024xf32>
    %cst_2 = arith.constant 1.500000e+00 : f32
    %7 = vector.broadcast %cst_2 : f32 to vector<8x1024xf32>
    %8 = arith.subf %7, %6 : vector<8x1024xf32>
    %9 = arith.mulf %8, %8 : vector<8x1024xf32>
    %cst_3 = arith.constant 0.000000e+00 : f32
    %10 = vector.broadcast %cst_3 : f32 to vector<8x1024xf32>
    %11 = arith.select %5, %9, %10 : vector<8x1024xi1>, vector<8x1024xf32>
    %cst_4 = arith.constant 0.000000e+00 : f32
    %12 = vector.broadcast %cst_4 : f32 to vector<8x1024xf32>
    %13 = arith.cmpf ogt, %11, %12 : vector<8x1024xf32>
    %14 = arith.extui %13 : vector<8x1024xi1> to vector<8x1024xi32>
    %15 = arith.sitofp %14 : vector<8x1024xi32> to vector<8x1024xf32>
    %c0_5 = arith.constant 0 : index
    %c0_6 = arith.constant 0 : index
    %16 = vector.load %arg6[%c0_5, %c0_6] : memref<8x1024xf32, #tpu.memory_space<vmem>>, vector<8x1024xf32>
    %17 = vector.shape_cast %15 : vector<8x1024xf32> to vector<1x8x1024xf32>
    %cst_7 = arith.constant dense<0.000000e+00> : vector<8x1024xf32>
    %18 = vector.multi_reduction <add>, %17, %cst_7 [0] : vector<1x8x1024xf32> to vector<8x1024xf32>
    %19 = arith.addf %16, %18 : vector<8x1024xf32>
    %c0_8 = arith.constant 0 : index
    %c0_9 = arith.constant 0 : index
    %20 = vector.load %arg6[%c0_8, %c0_9] : memref<8x1024xf32, #tpu.memory_space<vmem>>, vector<8x1024xf32>
    tpu.vector_store %arg6[%c0_8, %c0_9], %19 {strides = array<i32>} : memref<8x1024xf32, #tpu.memory_space<vmem>>, vector<8x1024xf32>,
    %c0_10 = arith.constant 0 : index
    %c0_11 = arith.constant 0 : index
    %21 = vector.load %arg5[%c0_10, %c0_11] : memref<8x1024xf32, #tpu.memory_space<vmem>>, vector<8x1024xf32>
    %22 = vector.shape_cast %11 : vector<8x1024xf32> to vector<1x8x1024xf32>
    %cst_12 = arith.constant dense<0.000000e+00> : vector<8x1024xf32>
    %23 = vector.multi_reduction <add>, %22, %cst_12 [0] : vector<1x8x1024xf32> to vector<8x1024xf32>
    %24 = arith.addf %21, %23 : vector<8x1024xf32>
    %c0_13 = arith.constant 0 : index
    %c0_14 = arith.constant 0 : index
    %25 = vector.load %arg5[%c0_13, %c0_14] : memref<8x1024xf32, #tpu.memory_space<vmem>>, vector<8x1024xf32>
    tpu.vector_store %arg5[%c0_13, %c0_14], %24 {strides = array<i32>} : memref<8x1024xf32, #tpu.memory_space<vmem>>, vector<8x1024xf32>,
    %c0_i32_15 = arith.constant 0 : i32
    %26 = arith.cmpi eq, %arg1, %c0_i32_15 : i32
    %27 = arith.extui %26 : i1 to i32
    %c0_i32_16 = arith.constant 0 : i32
    %28 = arith.cmpi ne, %27, %c0_i32_16 : i32
    scf.if %28 {
      %c0_17 = arith.constant 0 : index
      %c0_18 = arith.constant 0 : index
      %29 = vector.load %arg5[%c0_17, %c0_18] : memref<8x1024xf32, #tpu.memory_space<vmem>>, vector<8x1024xf32>
      %30 = vector.shape_cast %29 : vector<8x1024xf32> to vector<1x8x1024xf32>
      %cst_19 = arith.constant dense<0.000000e+00> : vector<1xf32>
      %31 = vector.multi_reduction <add>, %30, %cst_19 [1, 2] : vector<1x8x1024xf32> to vector<1xf32>
      %32 = vector.shape_cast %31 : vector<1xf32> to vector<1x1x1xf32>
      %33 = vector.extract %32[0, 0, 0] : f32 from vector<1x1x1xf32>
      %34 = vector.broadcast %33 : f32 to vector<1x1xf32>
      %35 = vector.shape_cast %34 : vector<1x1xf32> to vector<1x1x1xf32>
      %c0_20 = arith.constant 0 : index
      %c0_21 = arith.constant 0 : index
      %c0_22 = arith.constant 0 : index
      %36 = vector.load %arg3[%c0_20, %c0_21, %c0_22] : memref<1x1x1xf32, #tpu.memory_space<vmem>>, vector<1x1x1xf32>
      tpu.vector_store %arg3[%c0_20, %c0_21, %c0_22], %35 {strides = array<i32>} : memref<1x1x1xf32, #tpu.memory_space<vmem>>, vector<1x1x1xf32>,
      %c0_23 = arith.constant 0 : index
      %c0_24 = arith.constant 0 : index
      %37 = vector.load %arg6[%c0_23, %c0_24] : memref<8x1024xf32, #tpu.memory_space<vmem>>, vector<8x1024xf32>
      %38 = vector.shape_cast %37 : vector<8x1024xf32> to vector<1x8x1024xf32>
      %cst_25 = arith.constant dense<0.000000e+00> : vector<1xf32>
      %39 = vector.multi_reduction <add>, %38, %cst_25 [1, 2] : vector<1x8x1024xf32> to vector<1xf32>
      %40 = vector.shape_cast %39 : vector<1xf32> to vector<1x1x1xf32>
      %41 = vector.extract %40[0, 0, 0] : f32 from vector<1x1x1xf32>
      %42 = vector.broadcast %41 : f32 to vector<1x1xf32>
      %43 = vector.shape_cast %42 : vector<1x1xf32> to vector<1x1x1xf32>
      %c0_26 = arith.constant 0 : index
      %c0_27 = arith.constant 0 : index
      %c0_28 = arith.constant 0 : index
      %44 = vector.load %arg4[%c0_26, %c0_27, %c0_28] : memref<1x1x1xf32, #tpu.memory_space<vmem>>, vector<1x1x1xf32>
      tpu.vector_store %arg4[%c0_26, %c0_27, %c0_28], %43 {strides = array<i32>} : memref<1x1x1xf32, #tpu.memory_space<vmem>>, vector<1x1x1xf32>,
    } else {
    }
    return
  }
  func.func @transform_0(%arg0: i32, %arg1: i32) -> (i32, i32) {
    %c1_i32 = arith.constant 1 : i32
    %0 = arith.muli %arg0, %c1_i32 : i32
    %1 = arith.addi %0, %arg1 : i32
    %c0_i32 = arith.constant 0 : i32
    %c0_i32_0 = arith.constant 0 : i32
    return %1, %c0_i32 : i32, i32
  }
  func.func @transform_1(%arg0: i32, %arg1: i32) -> (i32, i32, i32) {
    %c0_i32 = arith.constant 0 : i32
    %c0_i32_0 = arith.constant 0 : i32
    %c0_i32_1 = arith.constant 0 : i32
    return %arg0, %c0_i32, %c0_i32_0 : i32, i32, i32
  }
  func.func @transform_2(%arg0: i32, %arg1: i32) -> (i32, i32, i32) {
    %c0_i32 = arith.constant 0 : i32
    %c0_i32_0 = arith.constant 0 : i32
    %c0_i32_1 = arith.constant 0 : i32
    return %arg0, %c0_i32, %c0_i32_0 : i32, i32, i32
  }
}

</mosaic_0001>

<bundles_post_ra>
// kernel: tpu_custom_call.1
= control target key start
LH: loop header
LB: loop body
LE: loop exit
PB: predicated region body
PF: predicated region fallthrough
CT: control target
= control target key end

     0   :  { %8 = vsyncpa [#allocation5], 0  ;;  %s616_s0 = inlined_call_operand.hbm [shape: f32[8,1024], index: 0, kind: input, shape index: {}]   ;;  %s617_s1 = inlined_call_operand.hbm [shape: f32[1,1,1], index: 1, kind: output, shape index: {0}]   ;;  %s618_s2 = inlined_call_operand.hbm [shape: f32[1,1,1], index: 2, kind: output, shape index: {1}]  }
   0x1   :  { %9 = vsyncpa [#allocation6], 0 }
   0x2   :  { %10 = vsyncpa [#allocation9], 0  ;;  %s20_s11 = sshll.u32 %s616_s0, 4  ;;  %s474_s12 = smov [#allocation4]   ;;  %s21_s11 = int_to_ptr.hbm [resolvable:$true] %s20_s11 }
   0x3   :  { %s22_s13 = sshll.u32 %s474_s12, 4  ;;  %s23_s13 = int_to_ptr.vmem [resolvable:$true] %s22_s13 }
   0x4   :  { %25 = dma.hbm_to_vmem [thread:$0]  %s21_s11, 1024, %s23_s13, [#allocation5]  }
   0x5   :  { %468 = dma.done.wait [#allocation5], 1024  }
   0x6   :  { %469 = vsyncadd [#allocation5], 4294966272  ;;  %v496_v0 = vld [vmem:[#allocation4] sm:$0xff]  ;;  %v498_v1 = vld [vmem:[#allocation4 + $0x8] sm:$0xff]  ;;  %s476_s0 = smov [#allocation7]   ;;  %s338_s17 = sshll.u32 %s617_s1, 4  ;;  %s339_s17 = int_to_ptr.hbm [resolvable:$true] %s338_s17 }
   0x7   :  { %380 = vrsqrt.f32 %v496_v0  ;;  %v501_v2 = vld [vmem:[#allocation4 + $0x10] sm:$0xff]  ;;  %v503_v3 = vld [vmem:[#allocation4 + $0x18] sm:$0xff]  ;;  %v505_v4 = vld [vmem:[#allocation4 + $0x20] sm:$0xff]  ;;  %vm74_vm0 = vcmp.eq.f32.partialorder %v496_v0, inf  ;;  %vm76_vm1 = vcmp.eq.f32.partialorder %v496_v0, 0.0  ;;  %v77_v13 = vand.u32 2147483648, %v496_v0 }
   0x8   :  { %382 = vrsqrt.f32 %v498_v1  ;;  %v508_v5 = vld [vmem:[#allocation4 + $0x28] sm:$0xff]  ;;  %v511_v6 = vld [vmem:[#allocation4 + $0x30] sm:$0xff]  ;;  %v514_v8 = vld [vmem:[#allocation4 + $0x38] sm:$0xff]  ;;  %vm86_vm2 = vcmp.eq.f32.partialorder %v498_v1, inf  ;;  %v89_v17 = vand.u32 2147483648, %v498_v1  ;;  %vm88_vm3 = vcmp.eq.f32.partialorder %v498_v1, 0.0 }
   0x9   :  { %384 = vrsqrt.f32 %v501_v2  ;;  %vm98_vm4 = vcmp.eq.f32.partialorder %v501_v2, inf  ;;  %v101_v21 = vand.u32 2147483648, %v501_v2  ;;  %v113_v23 = vand.u32 2147483648, %v503_v3  ;;  %s336_s14 = sshll.u32 %s476_s0, 4  ;;  %s477_s19 = smov [#allocation8]   ;;  %s337_s14 = int_to_ptr.vmem [resolvable:$true] %s336_s14 }
   0xa   :  { %386 = vrsqrt.f32 %v503_v3  ;;  %vm100_vm5 = vcmp.eq.f32.partialorder %v501_v2, 0.0  ;;  %vm110_vm6 = vcmp.eq.f32.partialorder %v503_v3, inf  ;;  %v125_v28 = vand.u32 2147483648, %v505_v4  ;;  %s347_s20 = sshll.u32 %s477_s19, 4  ;;  %s349_s23 = sshll.u32 %s618_s2, 4  ;;  %s348_s20 = int_to_ptr.vmem [resolvable:$true] %s347_s20  ;;  %s350_s23 = int_to_ptr.hbm [resolvable:$true] %s349_s23 }
   0xb   :  { %388 = vrsqrt.f32 %v505_v4  ;;  %vm112_vm7 = vcmp.eq.f32.partialorder %v503_v3, 0.0  ;;  %vm122_vm8 = vcmp.eq.f32.partialorder %v505_v4, inf  ;;  %v137_v33 = vand.u32 2147483648, %v508_v5 }
   0xc   :  { %390 = vrsqrt.f32 %v508_v5  ;;  %vm124_vm9 = vcmp.eq.f32.partialorder %v505_v4, 0.0  ;;  %vm134_vm10 = vcmp.eq.f32.partialorder %v508_v5, inf  ;;  %vm136_vm11 = vcmp.eq.f32.partialorder %v508_v5, 0.0 }
   0xd   :  { %v381_v7 = vpop.eup %380  ;;  %392 = vrsqrt.f32 %v511_v6  ;;  %vm146_vm12 = vcmp.eq.f32.partialorder %v511_v6, inf  ;;  %vm59_vm13 = vcmp.lt.f32.partialorder %v496_v0, 2.25  ;;  %vm60_vm14 = vcmp.lt.f32.partialorder %v498_v1, 2.25 }
   0xe   :  { %v68_v9 = vmul.f32 %v381_v7, %v496_v0  ;;  %v383_v10 = vpop.eup %382  ;;  %394 = vrsqrt.f32 %v514_v8  ;;  %vm158_vm15 = vcmp.eq.f32.partialorder %v514_v8, inf }
   0xf   :  { %v385_v12 = vpop.eup %384  ;;  %v80_v14 = vmul.f32 %v383_v10, %v498_v1 }
  0x10   :  { %v69_v11 = vmul.f32 %v381_v7, %v68_v9  ;;  %v387_v15 = vpop.eup %386  ;;  %v92_v18 = vmul.f32 %v385_v12, %v501_v2 }
  0x11   :  { %v389_v19 = vpop.eup %388  ;;  %v81_v20 = vmul.f32 %v383_v10, %v80_v14  ;;  %v104_v22 = vmul.f32 %v387_v15, %v503_v3 }
  0x12   :  { %v70_v16 = vmul.f32 0.5, %v69_v11  ;;  %v391_v24 = vpop.eup %390  ;;  %v93_v26 = vmul.f32 %v385_v12, %v92_v18  ;;  %v116_v27 = vmul.f32 %v389_v19, %v505_v4 }
  0x13   :  { %v393_v29 = vpop.eup %392  ;;  %v82_v30 = vmul.f32 0.5, %v81_v20  ;;  %v105_v31 = vmul.f32 %v387_v15, %v104_v22  ;;  %v128_v32 = vmul.f32 %v391_v24, %v508_v5 }
  0x14   :  { %v71_v25 = vsub.f32 1.5, %v70_v16  ;;  %v395_v34 = vpop.eup %394  ;;  %v94_v36 = vmul.f32 0.5, %v93_v26  ;;  %v117_v37 = vmul.f32 %v389_v19, %v116_v27  ;;  %v140_v38 = vmul.f32 %v393_v29, %v511_v6 }
  0x15   :  { %v83_v39 = vsub.f32 1.5, %v82_v30  ;;  %v106_v40 = vmul.f32 0.5, %v105_v31  ;;  %v129_v41 = vmul.f32 %v391_v24, %v128_v32  ;;  %v152_v42 = vmul.f32 %v395_v34, %v514_v8 }
  0x16   :  { %v72_v35 = vmul.f32 %v381_v7, %v71_v25  ;;  %v95_v44 = vsub.f32 1.5, %v94_v36  ;;  %v118_v45 = vmul.f32 0.5, %v117_v37  ;;  %v141_v46 = vmul.f32 %v393_v29, %v140_v38 }
  0x17   :  { %v84_v47 = vmul.f32 %v383_v10, %v83_v39  ;;  %v107_v48 = vsub.f32 1.5, %v106_v40  ;;  %v130_v49 = vmul.f32 0.5, %v129_v41  ;;  %v153_v50 = vmul.f32 %v395_v34, %v152_v42 }
  0x18   :  { %v73_v43 = vmul.f32 %v72_v35, %v496_v0  ;;  %v96_v52 = vmul.f32 %v385_v12, %v95_v44  ;;  %v119_v53 = vsub.f32 1.5, %v118_v45  ;;  %v142_v54 = vmul.f32 0.5, %v141_v46 }
  0x19   :  { %v85_v56 = vmul.f32 %v84_v47, %v498_v1  ;;  %v108_v57 = vmul.f32 %v387_v15, %v107_v48  ;;  %v131_v58 = vsub.f32 1.5, %v130_v49  ;;  %v154_v62 = vmul.f32 0.5, %v153_v50 }
  0x1a   :  { %v75_v51 = vsel %vm74_vm0, %v496_v0, %v73_v43  ;;  %v97_v59 = vmul.f32 %v96_v52, %v501_v2  ;;  %v120_v60 = vmul.f32 %v389_v19, %v119_v53  ;;  %v143_v61 = vsub.f32 1.5, %v142_v54 }
  0x1b   :  { %v78_v55 = vsel %vm76_vm1, %v77_v13, %v75_v51  ;;  %v87_v63 = vsel %vm86_vm2, %v498_v1, %v85_v56  ;;  %v109_v7 = vmul.f32 %v108_v57, %v503_v3  ;;  %v132_v9 = vmul.f32 %v391_v24, %v131_v58 }
  0x1c   :  { %v163_v10 = vsub.f32 1.5, %v78_v55  ;;  %v90_v11 = vsel %vm88_vm3, %v89_v17, %v87_v63  ;;  %v99_v12 = vsel %vm98_vm4, %v501_v2, %v97_v59  ;;  %v121_v13 = vmul.f32 %v120_v60, %v505_v4 }
  0x1d   :  { %v144_v14 = vmul.f32 %v393_v29, %v143_v61  ;;  %v102_v15 = vsel %vm100_vm5, %v101_v21, %v99_v12  ;;  %v111_v16 = vsel %vm110_vm6, %v503_v3, %v109_v7  ;;  %v133_v18 = vmul.f32 %v132_v9, %v508_v5 }
  0x1e   :  { %v155_v19 = vsub.f32 1.5, %v154_v62  ;;  %v114_v17 = vsel %vm112_vm7, %v113_v23, %v111_v16  ;;  %v123_v20 = vsel %vm122_vm8, %v505_v4, %v121_v13  ;;  %v164_v24 = vsub.f32 1.5, %v90_v11 }
  0x1f   :  { %v145_v22 = vmul.f32 %v144_v14, %v511_v6  ;;  %v126_v21 = vsel %vm124_vm9, %v125_v28, %v123_v20  ;;  %v135_v25 = vsel %vm134_vm10, %v508_v5, %v133_v18  ;;  %v165_v27 = vsub.f32 1.5, %v102_v15 }
  0x20   :  { %v156_v26 = vmul.f32 %v395_v34, %v155_v19  ;;  %v138_v29 = vsel %vm136_vm11, %v137_v33, %v135_v25  ;;  %v149_v23 = vand.u32 2147483648, %v511_v6  ;;  %v166_v30 = vsub.f32 1.5, %v114_v17 }
  0x21   :  { %v147_v31 = vsel %vm146_vm12, %v511_v6, %v145_v22  ;;  %vm148_vm0 = vcmp.eq.f32.partialorder %v511_v6, 0.0  ;;  %v171_v32 = vmul.f32 %v163_v10, %v163_v10  ;;  %v161_v34 = vand.u32 2147483648, %v514_v8 }
  0x22   :  { %v157_v28 = vmul.f32 %v156_v26, %v514_v8  ;;  %v167_v35 = vsub.f32 1.5, %v126_v21  ;;  %v172_v36 = vmul.f32 %v164_v24, %v164_v24  ;;  %v173_v37 = vmul.f32 %v165_v27, %v165_v27 }
  0x23   :  { %vm61_vm1 = vcmp.lt.f32.partialorder %v501_v2, 2.25  ;;  %vm160_vm2 = vcmp.eq.f32.partialorder %v514_v8, 0.0  ;;  %v168_v38 = vsub.f32 1.5, %v138_v29  ;;  %v150_v39 = vsel %vm148_vm0, %v149_v23, %v147_v31 }
  0x24   :  { %v159_v33 = vsel %vm158_vm15, %v514_v8, %v157_v28  ;;  %v174_v40 = vmul.f32 %v166_v30, %v166_v30  ;;  %vm62_vm3 = vcmp.lt.f32.partialorder %v503_v3, 2.25  ;;  %v179_v41 = vsel %vm59_vm13, %v171_v32, 0.0 }
  0x25   :  { %v180_v42 = vsel %vm60_vm14, %v172_v36, 0.0  ;;  %v162_v43 = vsel %vm160_vm2, %v161_v34, %v159_v33  ;;  %v175_v44 = vmul.f32 %v167_v35, %v167_v35  ;;  %v181_v45 = vsel %vm61_vm1, %v173_v37, 0.0 }
  0x26   :  { %vm188_vm4 = vcmp.gt.f32.partialorder %v180_v42, 0.0  ;;  %vm63_vm5 = vcmp.lt.f32.partialorder %v505_v4, 2.25  ;;  %v169_v2 = vsub.f32 1.5, %v150_v39  ;;  %v176_v46 = vmul.f32 %v168_v38, %v168_v38 }
  0x27   :  { %vm189_vm6 = vcmp.gt.f32.partialorder %v181_v45, 0.0  ;;  %v182_v47 = vsel %vm62_vm3, %v174_v40, 0.0  ;;  %v286_v48 = vadd.f32 %v180_v42, %v179_v41  ;;  %vm187_vm7 = vcmp.gt.f32.partialorder %v179_v41, 0.0 }
  0x28   :  { %v475_v49 = vmov 0.0   ;;  %vm64_vm8 = vcmp.lt.f32.partialorder %v508_v5, 2.25  ;;  %v170_v0 = vsub.f32 1.5, %v162_v43  ;;  %vm190_vm9 = vcmp.gt.f32.partialorder %v182_v47, 0.0 }
  0x29   :  { %v365_v3 = vsel %vm188_vm4, 1.0, %v475_v49  ;;  %v364_v1 = vsel %vm187_vm7, 1.0, %v475_v49  ;;  %v183_v50 = vsel %vm63_vm5, %v175_v44, 0.0  ;;  %v287_v51 = vadd.f32 %v286_v48, %v181_v45 }
  0x2a   :  { %v366_v52 = vsel %vm189_vm6, 1.0, %v475_v49  ;;  %v177_v53 = vmul.f32 %v169_v2, %v169_v2  ;;  %vm191_vm10 = vcmp.gt.f32.partialorder %v183_v50, 0.0  ;;  %v313_v54 = vadd.f32 %v365_v3, %v364_v1 }
  0x2b   :  { %vm65_vm11 = vcmp.lt.f32.partialorder %v511_v6, 2.25  ;;  %v184_v4 = vsel %vm64_vm8, %v176_v46, 0.0  ;;  %v288_v55 = vadd.f32 %v287_v51, %v182_v47  ;;  %v367_v56 = vsel %vm190_vm9, 1.0, %v475_v49 }
  0x2c   :  { %v178_v57 = vmul.f32 %v170_v0, %v170_v0  ;;  %vm192_vm12 = vcmp.gt.f32.partialorder %v184_v4, 0.0  ;;  %v314_v58 = vadd.f32 %v366_v52, %v313_v54  ;;  %vm66_vm13 = vcmp.lt.f32.partialorder %v514_v8, 2.25 }
  0x2d   :  { %v289_v5 = vadd.f32 %v288_v55, %v183_v50  ;;  %v368_v59 = vsel %vm191_vm10, 1.0, %v475_v49  ;;  %v185_v60 = vsel %vm65_vm11, %v177_v53, 0.0  ;;  %v369_v63 = vsel %vm192_vm12, 1.0, %v475_v49 }
  0x2e   :  { %v315_v61 = vadd.f32 %v367_v56, %v314_v58  ;;  %vm193_vm14 = vcmp.gt.f32.partialorder %v185_v60, 0.0  ;;  %v186_v7 = vsel %vm66_vm13, %v178_v57, 0.0  ;;  %vm303_vm0 = vcmask 0  }
  0x2f   :  { %v290_v62 = vadd.f32 %v289_v5, %v184_v4  ;;  %v370_v11 = vsel %vm193_vm14, 1.0, %v475_v49  ;;  %vm194_vm15 = vcmp.gt.f32.partialorder %v186_v7, 0.0 }
  0x30   :  { %v316_v9 = vadd.f32 %v368_v59, %v315_v61  ;;  %v371_v14 = vsel %vm194_vm15, 1.0, %v475_v49 }
  0x31   :  { %v291_v10 = vadd.f32 %v290_v62, %v185_v60 }
  0x32   :  { %v317_v6 = vadd.f32 %v369_v63, %v316_v9 }
  0x33   :  { %v292_v12 = vadd.f32 %v291_v10, %v186_v7 }
  0x34   :  { %v318_v13 = vadd.f32 %v370_v11, %v317_v6 }
  0x35   :  { %293 = vadd.xlane.f32.xlu0 %v292_v12 }
  0x36   :  { %v319_v15 = vadd.f32 %v371_v14, %v318_v13 }
  0x3d   :  { %320 = vadd.xlane.f32.xlu0 %v319_v15 }
  0xa8   :  { %v294_v8 = vpop.xlane.xlu0 %293 }
  0xa9   :  { %v295_v16 = vrot.slane %v294_v8, 4 }
  0xab   :  { %v296_v18 = vadd.f32 %v295_v16, %v294_v8 }
  0xad   :  { %v297_v19 = vrot.slane %v296_v18, 2 }
  0xaf   :  { %v298_v17 = vadd.f32 %v297_v19, %v296_v18 }
  0xb0   :  { %v321_v20 = vpop.xlane.xlu0 %320 }
  0xb1   :  { %v322_v22 = vrot.slane %v321_v20, 4  ;;  %v299_v24 = vrot.slane %v298_v17, 1 }
  0xb3   :  { %v323_v21 = vadd.f32 %v322_v22, %v321_v20  ;;  %v300_v25 = vadd.f32 %v299_v24, %v298_v17 }
  0xb5   :  { %v324_v26 = vrot.slane %v323_v21, 2  ;;  %372 = vpush %v300_v25 }
  0xb7   :  { %v325_v27 = vadd.f32 %v324_v26, %v323_v21 }
  0xb9   :  { %v326_v29 = vrot.slane %v325_v27, 1 }
  0xbb   :  { %v327_v23 = vadd.f32 %v326_v29, %v325_v27 }
  0xbd   :  { %374 = vpush %v327_v23 }
  0xe6   :  { %s373_s18 = spop %372 }
  0xe7   :  { %v302_v30 = vstv %s373_s18 }
  0xe8   :  { %304 = vst.msk [vmem:[#allocation7] sm:$0x1] %vm303_vm0, %v302_v30 }
  0xe9   :  { %341 = dma.vmem_to_hbm [thread:$0]  %s337_s14, 16, %s339_s17, [#allocation6]  }
  0xee   :  { %s375_s24 = spop %374 }
  0xef   :  { %v329_v31 = vstv %s375_s24 }
  0xf0   :  { %330 = vst.msk [vmem:[#allocation8] sm:$0x1] %vm303_vm0, %v329_v31 }
  0xf1   :  { %352 = dma.vmem_to_hbm [thread:$0]  %s348_s20, 16, %s350_s23, [#allocation9]  }
  0xf2   :  { %470 = dma.done.wait [#allocation6], 16  }
  0xf3   :  { %471 = vsyncadd [#allocation6], 4294967280 }
  0xf4   :  { %472 = dma.done.wait [#allocation9], 16  }
  0xf5   :  { %473 = vsyncadd [#allocation9], 4294967280 }
  0xf6   :  { %361 = vsyncpa [#allocation5], 1 }
  0xf7   :  { %362 = vsyncpa [#allocation6], 1 }
  0xf8   :  { %363 = vsyncpa [#allocation9], 1 }

</bundles_post_ra>
